<compile_context>
chip_gen: v7x
topology: tpu7x:2x2x1
jax: 0.10.0
libtpu: 0.0.40
codegen_flags: <defaults>
</compile_context>

<pallas_src>
import jax
import jax.numpy as jnp
from jax.experimental import pallas as pl
from jax.experimental.pallas import tpu as pltpu


def _identity_kernel(x_ref, o_ref):
    # Whole-block view: single VMEM load + single VMEM store.
    o_ref[...] = x_ref[...]


# Gridless (whole array resident in VMEM) only while input + output blocks
# stay well inside the smallest scoped-VMEM budget (v5e: 16 MiB default).
_GRIDLESS_VMEM_BYTES = 4 * 1024 * 1024   # per-array; in + out => 2x this
# Per-block input-bytes target for the tiled fallback (>=512 rows of f32x128
# style blocks; large blocks reach ~85% of HBM roofline vs ~29% at tile 128).
_TILE_TARGET_BYTES = 2 * 1024 * 1024


def simple_controller_forward(x):
    """Pallas TPU implementation of SimpleController.forward: returns x."""
    x = jnp.asarray(x)
    if x.size == 0:
        return x

    orig_shape = x.shape
    if x.ndim < 2:
        x = x.reshape(1, -1)

    nbytes = x.size * x.dtype.itemsize

    if nbytes <= _GRIDLESS_VMEM_BYTES:
        # Small path: no grid, full-array VMEM block, output aliased to input.
        out = pl.pallas_call(
            _identity_kernel,
            out_shape=jax.ShapeDtypeStruct(x.shape, x.dtype),
            in_specs=[pl.BlockSpec(memory_space=pltpu.MemorySpace.VMEM)],
            out_specs=pl.BlockSpec(memory_space=pltpu.MemorySpace.VMEM),
            input_output_aliases={0: 0},
        )(x)
        return out.reshape(orig_shape)

    # Large-input fallback: tiled, row-parallel copy.  Keep the last (lane)
    # dim at full extent so stores stay unmasked; tile only the row axis.
    cols = x.shape[-1]
    rows = x.size // cols
    x2 = x.reshape(rows, cols)

    row_bytes = cols * x.dtype.itemsize
    block_rows = (_TILE_TARGET_BYTES // max(row_bytes, 1)) // 8 * 8
    block_rows = max(8, block_rows)
    block_rows = min(block_rows, rows)  # == rows (full extent) or multiple of 8

    grid = (pl.cdiv(rows, block_rows),)
    out2 = pl.pallas_call(
        _identity_kernel,
        out_shape=jax.ShapeDtypeStruct((rows, cols), x.dtype),
        grid=grid,
        in_specs=[pl.BlockSpec((block_rows, cols), lambda i: (i, 0))],
        out_specs=pl.BlockSpec((block_rows, cols), lambda i: (i, 0)),
        input_output_aliases={0: 0},
        compiler_params=pltpu.CompilerParams(
            dimension_semantics=("parallel",)),
    )(x2)
    return out2.reshape(orig_shape)


class SimpleController:
    """Mirror of the PyTorch SimpleController API."""

    def __init__(self, num_inputs, num_outputs):
        self.num_inputs = num_inputs
        self.num_outputs = num_outputs

    def size(self):
        return (self.num_inputs, self.num_outputs)

    def __call__(self, x):
        return simple_controller_forward(x)


if __name__ == "__main__":
    num_inputs, num_outputs = 32, 32
    batch = 16

    key = jax.random.PRNGKey(0)
    x = jax.random.normal(key, (batch, num_inputs), dtype=jnp.float32)
    # Independent reference copy (the pallas output aliases the input buffer,
    # so do not reuse `x` itself for the check).
    x_expected = jax.random.normal(key, (batch, num_inputs), dtype=jnp.float32)

    controller = SimpleController(num_inputs, num_outputs)
    out = controller(x)
    out = jax.block_until_ready(out)

    assert controller.size() == (num_inputs, num_outputs)
    assert out.shape == x_expected.shape
    assert out.dtype == x_expected.dtype
    assert jnp.array_equal(out, x_expected)

    print("KERNEL_OK")
</pallas_src>

<mosaic_0001>
module attributes {stable_mosaic.version = 11 : i64} {
  func.func @_identity_kernel(%arg0: memref<16x32xf32, #tpu.memory_space<vmem>>, %arg1: memref<16x32xf32, #tpu.memory_space<vmem>>) attributes {dimension_semantics = [], scalar_prefetch = 0 : i64, scratch_operands = 0 : i64, tpu.core_type = #tpu.core_type<tc>} {
    %c0 = arith.constant 0 : index
    %c0_0 = arith.constant 0 : index
    %0 = vector.load %arg0[%c0, %c0_0] : memref<16x32xf32, #tpu.memory_space<vmem>>, vector<16x32xf32>
    %c0_1 = arith.constant 0 : index
    %c0_2 = arith.constant 0 : index
    %1 = vector.load %arg1[%c0_1, %c0_2] : memref<16x32xf32, #tpu.memory_space<vmem>>, vector<16x32xf32>
    tpu.vector_store %arg1[%c0_1, %c0_2], %0 {strides = array<i32>} : memref<16x32xf32, #tpu.memory_space<vmem>>, vector<16x32xf32>,
    return
  }
}

</mosaic_0001>

<bundles_post_ra>
// kernel: tpu_custom_call.1
= control target key start
LH: loop header
LB: loop body
LE: loop exit
PB: predicated region body
PF: predicated region fallthrough
CT: control target
= control target key end

     0   :  { %6 = vsyncpa [#allocation3], 0  ;;  %s135_s0 = inlined_call_operand.hbm [shape: f32[16,32], index: 0, kind: input, shape index: {}, may-alias: {0,1}]   ;;  %s136_s1 = inlined_call_operand.hbm [shape: f32[16,32], index: 1, kind: output, shape index: {}, may-alias: {0,1}]  }
   0x1   :  { %7 = vsyncpa [#allocation4], 0  ;;  %s97_s6 = smov [#allocation2]   ;;  %s49_s10 = scalar_lea.hbm %s135_s0, 256 }
   0x2   :  { %s13_s7 = sshll.u32 %s97_s6, 4  ;;  %p50_p0 = scmp.ne.s32.totalorder %s135_s0, %s49_s10  ;;  %s14_s7 = int_to_ptr.vmem [resolvable:$true] %s13_s7 }
   0x3   :  { %p53_p1 = scmp.lt.u32.totalorder %s49_s10, %s135_s0 }
   0x5   :  { %p55_p2 = pnand %p53_p1, %p50_p0 }
   0x7   :  { %58 = shalt.err (!%p55_p2)
}
   0x8   :  { %s59_s15 = scalar_lea.vmem %s14_s7, 256  ;;  %p64_p4 = scmp.lt.s32.totalorder %s14_s7, %s14_s7 }
   0x9   :  { %p60_p3 = scmp.ne.s32.totalorder %s14_s7, %s59_s15  ;;  %p65_p5 = scmp.lt.s32.totalorder %s59_s15, %s59_s15 }
   0xb   :  { %p66_p6 = por %p65_p5, %p64_p4 }
   0xd   :  { %p67_p7 = pnand %p66_p6, %p60_p3 }
   0xf   :  { %70 = shalt.err (!%p67_p7)
}
  0x10   :  { %s98_s16 = smov 128   ;;  %s99_s17 = smov 8  }
  0x11   :  { %19 = dma.hbm_to_vmem [thread:$0]  %s135_s0, 256, %s14_s7, [#allocation3], %s98_s16, %s98_s16, %s99_s17  }
  0x12   :  { %93 = dma.done.wait [#allocation3], 256  }
  0x13   :  { %94 = vsyncadd [#allocation3], 4294967040  ;;  %s100_s20 = smov [#allocation5]   ;;  %vm25_vm0 = vcmask 261120   ;;  %v23_v0 = vld [vmem:[#allocation2] sm:$0xff]  ;;  %v24_v1 = vld [vmem:[#allocation2 + $0x8] sm:$0xff] }
  0x14   :  { %s33_s21 = sshll.u32 %s100_s20, 4  ;;  %26 = vst.msk [vmem:[#allocation5] sm:$0xff] %vm25_vm0, %v23_v0  ;;  %27 = vst.msk [vmem:[#allocation5 + $0x8] sm:$0xff] %vm25_vm0, %v24_v1  ;;  %s34_s21 = int_to_ptr.vmem [resolvable:$true] %s33_s21 }
  0x15   :  { %s71_s22 = scalar_lea.vmem %s34_s21, 256  ;;  %p76_p9 = scmp.lt.s32.totalorder %s34_s21, %s34_s21 }
  0x16   :  { %p72_p8 = scmp.ne.s32.totalorder %s34_s21, %s71_s22  ;;  %p77_p10 = scmp.lt.s32.totalorder %s71_s22, %s71_s22 }
  0x18   :  { %p78_p11 = por %p77_p10, %p76_p9 }
  0x1a   :  { %p79_p12 = pnand %p78_p11, %p72_p8 }
  0x1c   :  { %82 = shalt.err (!%p79_p12)
}
  0x1d   :  { %s83_s0 = scalar_lea.hbm %s136_s1, 256 }
  0x1e   :  { %p84_p13 = scmp.ne.s32.totalorder %s136_s1, %s83_s0  ;;  %p87_p0 = scmp.lt.u32.totalorder %s83_s0, %s136_s1 }
  0x20   :  { %p89_p1 = pnand %p87_p0, %p84_p13 }
  0x22   :  { %92 = shalt.err (!%p89_p1)
}
  0x23   :  { %39 = dma.vmem_to_hbm [thread:$0]  %s34_s21, 256, %s136_s1, [#allocation4], %s98_s16, %s98_s16, %s99_s17  }
  0x24   :  { %95 = dma.done.wait [#allocation4], 256  }
  0x25   :  { %96 = vsyncadd [#allocation4], 4294967040 }
  0x26   :  { %43 = vsyncpa [#allocation3], 1 }
  0x27   :  { %44 = vsyncpa [#allocation4], 1 }

</bundles_post_ra>
